<compile_context>
chip_gen: v5e
topology: v5e:2x2
jax: 0.10.0
libtpu: 0.0.40
codegen_flags: <defaults>
</compile_context>

<pallas_src>
import functools

import jax
import jax.numpy as jnp
from jax import lax
from jax.experimental import pallas as pl
from jax.experimental.pallas import tpu as pltpu


def _round_up(x, m):
    return ((x + m - 1) // m) * m


def _pick_tile(batch, in_size, itemsize):
    """Batch tile: large multiple of 128, capped by a VMEM budget for the
    double-buffered x block, shrunk to keep >=2 grid steps when batch allows
    (v7x has 2 TensorCores and the batch axis is 'parallel')."""
    lane_in = _round_up(in_size, 128)          # x block is lane-padded in VMEM
    budget = 16 << 20                          # headroom under v7x 32 MiB scoped VMEM
    cap = max(128, min(2048, (budget // (2 * lane_in * itemsize)) // 128 * 128))
    tile = min(_round_up(batch, 128), cap)
    if batch > 128 and pl.cdiv(batch, tile) < 2:
        tile = min(tile, _round_up(pl.cdiv(batch, 2), 128))
    return max(tile, 128)


# ----------------------------- kernels --------------------------------------

def _forward_tile(x_ref, w1t_ref, b1_ref, w2_ref, b2_ref):
    # Layer 1 on the MXU, batch on lanes: contract last dims of (H_pad, IN) and
    # (TB, IN) -> (H_pad, TB).  No materialized x transpose in the kernel body.
    h1_t = lax.dot_general(
        w1t_ref[...], x_ref[...],
        dimension_numbers=(((1,), (1,)), ((), ())),
        preferred_element_type=jnp.float32)
    h1_t = jnp.maximum(h1_t + b1_ref[...], 0.0)            # f32 bias bcast along lanes
    # Layer 2 (out_features == 1): VPU multiply + sublane reduction -> (1, TB).
    return jnp.sum(h1_t * w2_ref[...], axis=0, keepdims=True) + b2_ref[0, 0]


def _mlp_pred_kernel(x_ref, w1t_ref, b1_ref, w2_ref, b2_ref, pred_ref):
    pred = _forward_tile(x_ref, w1t_ref, b1_ref, w2_ref, b2_ref)
    pred_ref[...] = pred.astype(pred_ref.dtype)             # lane-dense store


def _mlp_loss_kernel(x_ref, w1t_ref, b1_ref, w2_ref, b2_ref, y_ref,
                     pred_ref, part_ref, *, batch, tile, needs_mask):
    pred = _forward_tile(x_ref, w1t_ref, b1_ref, w2_ref, b2_ref)
    pred_ref[...] = pred.astype(pred_ref.dtype)
    diff = pred - y_ref[...].astype(jnp.float32)             # (1, TB), f32

    def _store(d):
        part_ref[0, 0] = jnp.sum(jnp.abs(d))
        part_ref[0, 1] = jnp.sum(d * d)

    if needs_mask:                                           # static: batch % tile != 0
        i = pl.program_id(0)
        last = pl.num_programs(0) - 1

        @pl.when(i != last)
        def _():
            _store(diff)

        @pl.when(i == last)                                  # only last tile pays for mask
        def _():
            rows = i * tile + lax.broadcasted_iota(jnp.int32, (1, tile), 1)
            _store(jnp.where(rows < batch, diff, 0.0))
    else:
        _store(diff)


# ----------------------------- wrapper ---------------------------------------

class MLPRegressionPallas:
    """Linear(input, hidden) -> ReLU -> Linear(hidden, 1); returns pred, or
    (pred, mae, mse) when y is given — matching MLPRegression.forward."""

    def __init__(self, input_size, hidden_size, key, matmul_dtype=jnp.bfloat16):
        k1, k2, k3, k4 = jax.random.split(key, 4)
        self.input_size = int(input_size)
        self.hidden_size = int(hidden_size)
        self.matmul_dtype = matmul_dtype
        self.h_pad = _round_up(hidden_size, 128)
        pad = self.h_pad - hidden_size

        # torch nn.Linear stores weight as (out, in); keep layer-1 in that layout
        # (hidden, input), zero-padded to a full lane width.  Padded hidden units
        # contribute exactly zero (zero w1 rows, zero b1, zero w2).
        w1t = jax.random.normal(k1, (hidden_size, input_size), jnp.float32) * 0.1
        b1 = jax.random.normal(k2, (hidden_size, 1), jnp.float32) * 0.1
        w2 = jax.random.normal(k3, (hidden_size, 1), jnp.float32) * 0.1
        self.w1t = jnp.pad(w1t, ((0, pad), (0, 0))).astype(matmul_dtype)  # (H_pad, IN)
        self.b1 = jnp.pad(b1, ((0, pad), (0, 0)))                         # (H_pad, 1)
        self.w2 = jnp.pad(w2, ((0, pad), (0, 0)))                         # (H_pad, 1)
        self.b2 = jax.random.normal(k4, (1, 1), jnp.float32) * 0.1

    def __call__(self, x, y=None):
        batch, in_size = x.shape
        assert in_size == self.input_size
        h_pad = self.h_pad
        x = x.astype(self.matmul_dtype)      # bf16 stream; accumulation stays f32
        tile = _pick_tile(batch, in_size, x.dtype.itemsize)
        grid = pl.cdiv(batch, tile)

        # x stays in its natural (B, IN) HBM layout — no wrapper pad / transpose.
        x_spec = pl.BlockSpec((tile, in_size), lambda i: (i, 0))
        w1_spec = pl.BlockSpec((h_pad, in_size), lambda i: (0, 0))   # grid-resident
        b1_spec = pl.BlockSpec((h_pad, 1), lambda i: (0, 0))         # grid-resident
        w2_spec = pl.BlockSpec((h_pad, 1), lambda i: (0, 0))         # grid-resident
        b2_spec = pl.BlockSpec((1, 1), lambda i: (0, 0),
                               memory_space=pltpu.MemorySpace.SMEM)
        pred_spec = pl.BlockSpec((1, tile), lambda i: (0, i))        # lane-dense rows

        compiler_params = pltpu.CompilerParams(dimension_semantics=("parallel",))
        flops = 2 * batch * in_size * h_pad + 3 * batch * h_pad
        bytes_accessed = (x.dtype.itemsize * batch * in_size
                          + self.w1t.dtype.itemsize * h_pad * in_size
                          + 4 * (batch + 2 * h_pad + 1))

        if y is None:
            pred_row = pl.pallas_call(
                _mlp_pred_kernel,
                grid=(grid,),
                in_specs=[x_spec, w1_spec, b1_spec, w2_spec, b2_spec],
                out_specs=pred_spec,
                out_shape=jax.ShapeDtypeStruct((1, batch), jnp.float32),
                compiler_params=compiler_params,
                cost_estimate=pl.CostEstimate(
                    flops=flops, transcendentals=0, bytes_accessed=bytes_accessed),
            )(x, self.w1t, self.b1, self.w2, self.b2)
            return pred_row.reshape(batch, 1)

        # Loss path. y is tiny, so pad it to the tiled extent (x is never padded).
        b_pad = grid * tile
        y_row = y.reshape(1, batch).astype(jnp.float32)
        if b_pad != batch:
            y_row = jnp.pad(y_row, ((0, 0), (0, b_pad - batch)))
        y_spec = pl.BlockSpec((1, tile), lambda i: (0, i))
        # One merged (sum|diff|, sum diff^2) SMEM block per tile.
        part_spec = pl.BlockSpec((1, 2), lambda i: (i, 0),
                                 memory_space=pltpu.MemorySpace.SMEM)

        kernel = functools.partial(_mlp_loss_kernel, batch=batch, tile=tile,
                                   needs_mask=(batch % tile != 0))
        pred_row, parts = pl.pallas_call(
            kernel,
            grid=(grid,),
            in_specs=[x_spec, w1_spec, b1_spec, w2_spec, b2_spec, y_spec],
            out_specs=(pred_spec, part_spec),
            out_shape=(
                jax.ShapeDtypeStruct((1, batch), jnp.float32),
                jax.ShapeDtypeStruct((grid, 2), jnp.float32),
            ),
            compiler_params=compiler_params,
            cost_estimate=pl.CostEstimate(
                flops=flops, transcendentals=0,
                bytes_accessed=bytes_accessed + 4 * batch),
        )(x, self.w1t, self.b1, self.w2, self.b2, y_row)

        pred = pred_row.reshape(batch, 1)
        mae = jnp.sum(parts[:, 0]) / batch
        mse = jnp.sum(parts[:, 1]) / batch
        return pred, mae, mse


# ----------------------------- reference (pure JAX) ---------------------------

def _ref_forward(model, x, y=None):
    # Mirrors the kernel's mixed precision: bf16 operands, f32 accumulation.
    xc = x.astype(model.matmul_dtype).astype(jnp.float32)
    w1 = model.w1t.astype(jnp.float32)
    h1 = jnp.maximum(xc @ w1.T + model.b1.T, 0.0)
    pred = h1 @ model.w2 + model.b2
    if y is None:
        return pred
    diff = pred - y
    return pred, jnp.mean(jnp.abs(diff)), jnp.mean(diff * diff)


if __name__ == "__main__":
    input_size, hidden_size = 16, 32
    key = jax.random.PRNGKey(0)
    kp, kx, ky, kx2, ky2, kx3, ky3 = jax.random.split(key, 7)
    model = MLPRegressionPallas(input_size, hidden_size, kp)

    tol = dict(atol=2e-3, rtol=2e-3)

    # small batch: pred-only and (pred, mae, mse) paths
    x = jax.random.normal(kx, (8, input_size), jnp.float32)
    y = jax.random.normal(ky, (8, 1), jnp.float32)
    pred = jax.block_until_ready(model(x))
    pred2, mae, mse = jax.block_until_ready(model(x, y))
    rp = _ref_forward(model, x)
    rp2, rmae, rmse = _ref_forward(model, x, y)
    assert jnp.allclose(pred, rp, **tol)
    assert jnp.allclose(pred2, rp2, **tol)
    assert jnp.allclose(mae, rmae, **tol)
    assert jnp.allclose(mse, rmse, **tol)

    # odd batch: ragged last block + in-kernel padding mask
    x2 = jax.random.normal(kx2, (10, input_size), jnp.float32)
    y2 = jax.random.normal(ky2, (10, 1), jnp.float32)
    p2, mae2, mse2 = jax.block_until_ready(model(x2, y2))
    rp2b, rmae2, rmse2 = _ref_forward(model, x2, y2)
    assert jnp.allclose(p2, rp2b, **tol)
    assert jnp.allclose(mae2, rmae2, **tol)
    assert jnp.allclose(mse2, rmse2, **tol)

    # larger batch: exercises grid >= 2 ("parallel" split) + ragged last block
    x3 = jax.random.normal(kx3, (300, input_size), jnp.float32)
    y3 = jax.random.normal(ky3, (300, 1), jnp.float32)
    p3, mae3, mse3 = jax.block_until_ready(model(x3, y3))
    rp3, rmae3, rmse3 = _ref_forward(model, x3, y3)
    assert jnp.allclose(p3, rp3, **tol)
    assert jnp.allclose(mae3, rmae3, **tol)
    assert jnp.allclose(mse3, rmse3, **tol)

    print("KERNEL_OK")
</pallas_src>

<mosaic_0001>
module attributes {stable_mosaic.version = 11 : i64} {
  func.func @_mlp_pred_kernel(%arg0: i32, %arg1: memref<128x16xbf16, #tpu.memory_space<vmem>>, %arg2: memref<128x16xbf16, #tpu.memory_space<vmem>>, %arg3: memref<128x1xf32, #tpu.memory_space<vmem>>, %arg4: memref<128x1xf32, #tpu.memory_space<vmem>>, %arg5: memref<1x1xf32, #tpu.memory_space<smem>>, %arg6: memref<1x128xf32, #tpu.memory_space<vmem>>) attributes {dimension_semantics = [#tpu.dimension_semantics<parallel>], iteration_bounds = array<i64: 1>, scalar_prefetch = 0 : i64, scratch_operands = 0 : i64, tpu.core_type = #tpu.core_type<tc>, window_params = [{transform_indices = @transform_0, window_bounds = array<i64: 128, 16>}, {pipeline_mode = #tpu.pipeline_mode<synchronous>, transform_indices = @transform_1, window_bounds = array<i64: 128, 16>}, {pipeline_mode = #tpu.pipeline_mode<synchronous>, transform_indices = @transform_2, window_bounds = array<i64: 128, 1>}, {pipeline_mode = #tpu.pipeline_mode<synchronous>, transform_indices = @transform_3, window_bounds = array<i64: 128, 1>}, {transform_indices = @transform_4, window_bounds = array<i64: 1, 1>}, {transform_indices = @transform_5, window_bounds = array<i64: 1, 128>}]} {
    %c0 = arith.constant 0 : index
    %c0_0 = arith.constant 0 : index
    %0 = vector.load %arg2[%c0, %c0_0] : memref<128x16xbf16, #tpu.memory_space<vmem>>, vector<128x16xbf16>
    %c0_1 = arith.constant 0 : index
    %c0_2 = arith.constant 0 : index
    %1 = vector.load %arg1[%c0_1, %c0_2] : memref<128x16xbf16, #tpu.memory_space<vmem>>, vector<128x16xbf16>
    %cst = arith.constant dense<0.000000e+00> : vector<128x128xf32>
    %2 = tpu.matmul %0, %1, %cst {dimension_numbers = #tpu.dot_dimension_numbers<[1], [1], [0], [0], [0, 0, 1, 0], [], []>} : vector<128x16xbf16>, vector<128x16xbf16>, vector<128x128xf32> -> vector<128x128xf32>
    %c0_3 = arith.constant 0 : index
    %c0_4 = arith.constant 0 : index
    %3 = vector.load %arg3[%c0_3, %c0_4] : memref<128x1xf32, #tpu.memory_space<vmem>>, vector<128x1xf32>
    %4 = vector.broadcast %3 : vector<128x1xf32> to vector<128x128xf32>
    %5 = arith.addf %2, %4 : vector<128x128xf32>
    %cst_5 = arith.constant 0.000000e+00 : f32
    %6 = vector.broadcast %cst_5 : f32 to vector<128x128xf32>
    %7 = arith.maximumf %5, %6 : vector<128x128xf32>
    %c0_6 = arith.constant 0 : index
    %c0_7 = arith.constant 0 : index
    %8 = vector.load %arg4[%c0_6, %c0_7] : memref<128x1xf32, #tpu.memory_space<vmem>>, vector<128x1xf32>
    %9 = vector.broadcast %8 : vector<128x1xf32> to vector<128x128xf32>
    %10 = arith.mulf %7, %9 : vector<128x128xf32>
    %cst_8 = arith.constant dense<0.000000e+00> : vector<128xf32>
    %11 = vector.multi_reduction <add>, %10, %cst_8 [0] : vector<128x128xf32> to vector<128xf32>
    %12 = vector.shape_cast %11 : vector<128xf32> to vector<1x128xf32>
    %c0_9 = arith.constant 0 : index
    %c0_10 = arith.constant 0 : index
    %13 = memref.load %arg5[%c0_9, %c0_10] : memref<1x1xf32, #tpu.memory_space<smem>>
    %14 = vector.broadcast %13 : f32 to vector<1x128xf32>
    %15 = arith.addf %12, %14 : vector<1x128xf32>
    %c0_11 = arith.constant 0 : index
    %c0_12 = arith.constant 0 : index
    %16 = vector.load %arg6[%c0_11, %c0_12] : memref<1x128xf32, #tpu.memory_space<vmem>>, vector<1x128xf32>
    tpu.vector_store %arg6[%c0_11, %c0_12], %15 {strides = array<i32>} : memref<1x128xf32, #tpu.memory_space<vmem>>, vector<1x128xf32>,
    return
  }
  func.func @transform_0(%arg0: i32) -> (i32, i32) {
    %c0_i32 = arith.constant 0 : i32
    %c0_i32_0 = arith.constant 0 : i32
    return %arg0, %c0_i32 : i32, i32
  }
  func.func @transform_1(%arg0: i32) -> (i32, i32) {
    %c0_i32 = arith.constant 0 : i32
    %c0_i32_0 = arith.constant 0 : i32
    %c0_i32_1 = arith.constant 0 : i32
    return %c0_i32, %c0_i32_0 : i32, i32
  }
  func.func @transform_2(%arg0: i32) -> (i32, i32) {
    %c0_i32 = arith.constant 0 : i32
    %c0_i32_0 = arith.constant 0 : i32
    %c0_i32_1 = arith.constant 0 : i32
    return %c0_i32, %c0_i32_0 : i32, i32
  }
  func.func @transform_3(%arg0: i32) -> (i32, i32) {
    %c0_i32 = arith.constant 0 : i32
    %c0_i32_0 = arith.constant 0 : i32
    %c0_i32_1 = arith.constant 0 : i32
    return %c0_i32, %c0_i32_0 : i32, i32
  }
  func.func @transform_4(%arg0: i32) -> (i32, i32) {
    %c0_i32 = arith.constant 0 : i32
    %c0_i32_0 = arith.constant 0 : i32
    %c0_i32_1 = arith.constant 0 : i32
    return %c0_i32, %c0_i32_0 : i32, i32
  }
  func.func @transform_5(%arg0: i32) -> (i32, i32) {
    %c0_i32 = arith.constant 0 : i32
    %c0_i32_0 = arith.constant 0 : i32
    return %c0_i32, %arg0 : i32, i32
  }
}

</mosaic_0001>

<bundles_post_ra>
// kernel: tpu_custom_call.1
= control target key start
LH: loop header
LB: loop body
LE: loop exit
PB: predicated region body
PF: predicated region fallthrough
CT: control target
= control target key end

     0   :  { %vm230_vm0 = vcmask 130048   ;;  %v640_v3 = vmov 0   ;;  %s853_s0 = inlined_call_operand.vmem [shape: bf16[8,16], index: 0, kind: input, shape index: {}]   ;;  %s854_s1 = inlined_call_operand.vmem [shape: bf16[128,16], index: 1, kind: input, shape index: {}]   ;;  %s855_s2 = inlined_call_operand.vmem [shape: f32[128,1], index: 2, kind: input, shape index: {}]   ;;  %s856_s3 = inlined_call_operand.vmem [shape: f32[128,1], index: 3, kind: input, shape index: {}]   ;;  %s857_s4 = inlined_call_operand.<no memory space> [shape: f32[1,1], index: 4, kind: input, shape index: {}]   ;;  %s858_s5 = inlined_call_operand.hbm [shape: f32[1,8], index: 5, kind: output, shape index: {}]  }
   0x1   :  { %v56_v0 = vld [vmem:[%s855_s2 + $0x10] sm:$0xff]  ;;  %v54_v1 = vld [vmem:[%s855_s2] sm:$0xff]  ;;  %v584_v2 = vld [vmem:[%s853_s0 + $0x38] sm:$0xff]  ;;  %612 = vset.pattern.permute.xlu1 %v640_v3  ;;  %611 = vset.pattern.permute.xlu0 %v640_v3 }
   0x2   :  { %82 = vperm.xlu1 %612, %v56_v0   ;;  %72 = vperm.xlu0 %611, %v54_v1   ;;  %v277_v4 = vsel %vm230_vm0, %v584_v2, 0  ;;  %v58_v5 = vld [vmem:[%s855_s2 + $0x20] sm:$0xff]  ;;  %v583_v6 = vld [vmem:[%s853_s0 + $0x30] sm:$0xff]  ;;  %v57_v7 = vld [vmem:[%s855_s2 + $0x18] sm:$0xff] }
   0x3   :  { %279 = vmatpush.bf16.xpose.msra.mxu0 %v277_v4  ;;  %585 = vmatpush.bf16.xpose.msra.mxu1 %v277_v4  ;;  %v55_v8 = vld [vmem:[%s855_s2 + $0x8] sm:$0xff] }
   0x4   :  { %586 = vmatpush.bf16.xpose.msra.mxu2 %v277_v4  ;;  %587 = vmatpush.bf16.xpose.msra.mxu3 %v277_v4 }
   0x5   :  { %613 = vset.pattern.permute.xlu2 %v640_v3 }
   0x6   :  { %92 = vperm.xlu2 %613, %v58_v5  }
   0x7   :  { %11 = vsyncpa [#allocation4], 0  ;;  %v274_v9 = vsel %vm230_vm0, %v583_v6, 0  ;;  %v59_v10 = vld [vmem:[%s855_s2 + $0x28] sm:$0xff]  ;;  %v61_v12 = vld [vmem:[%s855_s2 + $0x38] sm:$0xff]  ;;  %s641_s10 = smov [#allocation3]  }
   0x8   :  { %v582_v11 = vld [vmem:[%s853_s0 + $0x28] sm:$0xff]  ;;  %v60_v13 = vld [vmem:[%s855_s2 + $0x30] sm:$0xff]  ;;  %v62_v15 = vld [vmem:[%s855_s2 + $0x40] sm:$0xff]  ;;  %s486_s11 = sshll.u32 %s641_s10, 4  ;;  %s488_s14 = sshll.u32 %s858_s5, 4  ;;  %s487_s11 = int_to_ptr.vmem [resolvable:$true] %s486_s11  ;;  %s489_s14 = int_to_ptr.hbm [resolvable:$true] %s488_s14 }
   0x9   :  { %v271_v14 = vsel %vm230_vm0, %v582_v11, 0  ;;  %v581_v16 = vld [vmem:[%s853_s0 + $0x20] sm:$0xff]  ;;  %v64_v17 = vld [vmem:[%s855_s2 + $0x50] sm:$0xff]  ;;  %v63_v18 = vld [vmem:[%s855_s2 + $0x48] sm:$0xff] }
   0xa   :  { %87 = vperm.xlu1 %612, %v57_v7   ;;  %77 = vperm.xlu0 %611, %v55_v8   ;;  %v268_v19 = vsel %vm230_vm0, %v581_v16, 0  ;;  %v65_v20 = vld [vmem:[%s855_s2 + $0x58] sm:$0xff]  ;;  %v67_v22 = vld [vmem:[%s855_s2 + $0x68] sm:$0xff]  ;;  %v66_v23 = vld [vmem:[%s855_s2 + $0x60] sm:$0xff] }
   0xb   :  { %280 = vmatpush.bf16.xpose.msra.mxu0 %v274_v9  ;;  %588 = vmatpush.bf16.xpose.msra.mxu1 %v274_v9  ;;  %v580_v21 = vld [vmem:[%s853_s0 + $0x18] sm:$0xff]  ;;  %v68_v25 = vld [vmem:[%s855_s2 + $0x70] sm:$0xff]  ;;  %v344_v27 = vld [vmem:[%s856_s3] sm:$0xff] }
   0xc   :  { %589 = vmatpush.bf16.xpose.msra.mxu2 %v274_v9  ;;  %590 = vmatpush.bf16.xpose.msra.mxu3 %v274_v9  ;;  %v265_v24 = vsel %vm230_vm0, %v580_v21, 0  ;;  %v579_v26 = vld [vmem:[%s853_s0 + $0x10] sm:$0xff]  ;;  %v69_v28 = vld [vmem:[%s855_s2 + $0x78] sm:$0xff]  ;;  %v345_v30 = vld [vmem:[%s856_s3 + $0x8] sm:$0xff] }
   0xd   :  { %v262_v29 = vsel %vm230_vm0, %v579_v26, 0  ;;  %v578_v31 = vld [vmem:[%s853_s0 + $0x8] sm:$0xff]  ;;  %v347_v32 = vld [vmem:[%s856_s3 + $0x18] sm:$0xff]  ;;  %v346_v33 = vld [vmem:[%s856_s3 + $0x10] sm:$0xff] }
   0xe   :  { %97 = vperm.xlu2 %613, %v59_v10   ;;  %v259_v34 = vsel %vm230_vm0, %v578_v31, 0  ;;  %v348_v35 = vld [vmem:[%s856_s3 + $0x20] sm:$0xff]  ;;  %v350_v37 = vld [vmem:[%s856_s3 + $0x30] sm:$0xff]  ;;  %v349_v38 = vld [vmem:[%s856_s3 + $0x28] sm:$0xff] }
   0xf   :  { %v577_v36 = vld [vmem:[%s853_s0] sm:$0xff]  ;;  %v351_v40 = vld [vmem:[%s856_s3 + $0x38] sm:$0xff]  ;;  %v353_v41 = vld [vmem:[%s856_s3 + $0x48] sm:$0xff] }
  0x10   :  { %v256_v39 = vsel %vm230_vm0, %v577_v36, 0  ;;  %v352_v42 = vld [vmem:[%s856_s3 + $0x40] sm:$0xff]  ;;  %v571_v44 = vld [vmem:[%s854_s1 + $0x10] sm:$0xff]  ;;  %v355_v49 = vld [vmem:[%s856_s3 + $0x58] sm:$0xff] }
  0x11   :  { %v569_v43 = vld [vmem:[%s854_s1] sm:$0xff]  ;;  %v575_v46 = vld [vmem:[%s854_s1 + $0x30] sm:$0xff]  ;;  %v357_v50 = vld [vmem:[%s856_s3 + $0x68] sm:$0xff] }
  0x12   :  { %107 = vperm.xlu1 %612, %v61_v12   ;;  %102 = vperm.xlu0 %611, %v60_v13   ;;  %v573_v45 = vld [vmem:[%s854_s1 + $0x20] sm:$0xff]  ;;  %v354_v47 = vld [vmem:[%s856_s3 + $0x50] sm:$0xff]  ;;  %v359_v51 = vld [vmem:[%s856_s3 + $0x78] sm:$0xff] }
  0x13   :  { %281 = vmatpush.bf16.xpose.msra.mxu0 %v271_v14  ;;  %591 = vmatpush.bf16.xpose.msra.mxu1 %v271_v14  ;;  %v356_v48 = vld [vmem:[%s856_s3 + $0x60] sm:$0xff]  ;;  %v358_v52 = vld [vmem:[%s856_s3 + $0x70] sm:$0xff]  ;;  %v570_v53 = vld [vmem:[%s854_s1 + $0x8] sm:$0xff] }
  0x14   :  { %592 = vmatpush.bf16.xpose.msra.mxu2 %v271_v14  ;;  %593 = vmatpush.bf16.xpose.msra.mxu3 %v271_v14  ;;  %v572_v54 = vld [vmem:[%s854_s1 + $0x18] sm:$0xff]  ;;  %v574_v55 = vld [vmem:[%s854_s1 + $0x28] sm:$0xff] }
  0x15   :  { %v576_v56 = vld [vmem:[%s854_s1 + $0x38] sm:$0xff] }
  0x16   :  { %112 = vperm.xlu2 %613, %v62_v15  }
  0x1a   :  { %122 = vperm.xlu1 %612, %v64_v17   ;;  %117 = vperm.xlu0 %611, %v63_v18  }
  0x1b   :  { %282 = vmatpush.bf16.xpose.msra.mxu0 %v268_v19  ;;  %594 = vmatpush.bf16.xpose.msra.mxu1 %v268_v19 }
  0x1c   :  { %595 = vmatpush.bf16.xpose.msra.mxu2 %v268_v19  ;;  %596 = vmatpush.bf16.xpose.msra.mxu3 %v268_v19 }
  0x1e   :  { %127 = vperm.xlu2 %613, %v65_v20  }
  0x22   :  { %137 = vperm.xlu1 %612, %v67_v22   ;;  %132 = vperm.xlu0 %611, %v66_v23  }
  0x23   :  { %283 = vmatpush.bf16.xpose.msra.mxu0 %v265_v24  ;;  %597 = vmatpush.bf16.xpose.msra.mxu1 %v265_v24 }
  0x24   :  { %598 = vmatpush.bf16.xpose.msra.mxu2 %v265_v24  ;;  %599 = vmatpush.bf16.xpose.msra.mxu3 %v265_v24 }
  0x26   :  { %142 = vperm.xlu2 %613, %v68_v25  }
  0x2a   :  { %362 = vperm.xlu1 %612, %v344_v27   ;;  %147 = vperm.xlu0 %611, %v69_v28  }
  0x2b   :  { %284 = vmatpush.bf16.xpose.msra.mxu0 %v262_v29  ;;  %600 = vmatpush.bf16.xpose.msra.mxu1 %v262_v29 }
  0x2c   :  { %601 = vmatpush.bf16.xpose.msra.mxu2 %v262_v29  ;;  %602 = vmatpush.bf16.xpose.msra.mxu3 %v262_v29 }
  0x2e   :  { %367 = vperm.xlu2 %613, %v345_v30  }
  0x32   :  { %377 = vperm.xlu1 %612, %v347_v32   ;;  %372 = vperm.xlu0 %611, %v346_v33  }
  0x33   :  { %285 = vmatpush.bf16.xpose.msra.mxu0 %v259_v34  ;;  %603 = vmatpush.bf16.xpose.msra.mxu1 %v259_v34 }
  0x34   :  { %604 = vmatpush.bf16.xpose.msra.mxu2 %v259_v34  ;;  %605 = vmatpush.bf16.xpose.msra.mxu3 %v259_v34 }
  0x36   :  { %382 = vperm.xlu2 %613, %v348_v35  }
  0x3a   :  { %392 = vperm.xlu1 %612, %v350_v37   ;;  %387 = vperm.xlu0 %611, %v349_v38  }
  0x3b   :  { %286 = vmatpush.bf16.xpose.msra.mxu0 %v256_v39  ;;  %606 = vmatpush.bf16.xpose.msra.mxu1 %v256_v39 }
  0x3c   :  { %607 = vmatpush.bf16.xpose.msra.mxu2 %v256_v39  ;;  %608 = vmatpush.bf16.xpose.msra.mxu3 %v256_v39 }
  0x3e   :  { %397 = vperm.xlu2 %613, %v351_v40  }
  0x42   :  { %407 = vperm.xlu1 %612, %v353_v41   ;;  %402 = vperm.xlu0 %611, %v352_v42  }
  0x43   :  { %561 = vmatmul.msk.bf16.vlgmr.msra.gmra.mxu0 %vm230_vm0, %v569_v43  ;;  %563 = vmatmul.msk.bf16.vlgmr.msra.gmra.mxu1 %vm230_vm0, %v571_v44 }
  0x44   :  { %565 = vmatmul.msk.bf16.vlgmr.msra.gmra.mxu2 %vm230_vm0, %v573_v45  ;;  %567 = vmatmul.msk.bf16.vlgmr.msra.gmra.mxu3 %vm230_vm0, %v575_v46 }
  0x46   :  { %412 = vperm.xlu2 %613, %v354_v47  }
  0x4a   :  { %422 = vperm.xlu1 %612, %v356_v48   ;;  %417 = vperm.xlu0 %611, %v355_v49  }
  0x4e   :  { %427 = vperm.xlu2 %613, %v357_v50  }
  0x52   :  { %437 = vperm.xlu1 %612, %v359_v51   ;;  %432 = vperm.xlu0 %611, %v358_v52  }
  0x53   :  { %562 = vmatmul.msk.bf16.gmra.mxu0 %vm230_vm0, %v570_v53  ;;  %564 = vmatmul.msk.bf16.gmra.mxu1 %vm230_vm0, %v572_v54 }
  0x54   :  { %566 = vmatmul.msk.bf16.gmra.mxu2 %vm230_vm0, %v574_v55  ;;  %568 = vmatmul.msk.bf16.gmra.mxu3 %vm230_vm0, %v576_v56 }
  0x60   :  { %v93_v59 = vpop.permute.xlu2 %92 }
  0x68   :  { %v98_v62 = vpop.permute.xlu2 %97 }
  0x70   :  { %v113_v1 = vpop.permute.xlu2 %112 }
  0x74   :  { %v73_v57 = vpop.permute.xlu0 %72  ;;  %v83_v58 = vpop.permute.xlu1 %82 }
  0x78   :  { %v832_v4 = vpop.permute.xlu2 %127 }
  0x7c   :  { %v78_v60 = vpop.permute.xlu0 %77  ;;  %v88_v61 = vpop.permute.xlu1 %87 }
  0x80   :  { %v838_v7 = vpop.permute.xlu2 %142 }
  0x84   :  { %v103_v63 = vpop.permute.xlu0 %102  ;;  %v108_v0 = vpop.permute.xlu1 %107 }
  0x88   :  { %v368_v12 = vpop.permute.xlu2 %367 }
  0x8c   :  { %v118_v2 = vpop.permute.xlu0 %117  ;;  %v123_v3 = vpop.permute.xlu1 %122 }
  0x90   :  { %v383_v25 = vpop.permute.xlu2 %382 }
  0x94   :  { %v834_v5 = vpop.permute.xlu0 %132  ;;  %v836_v6 = vpop.permute.xlu1 %137 }
  0x98   :  { %v398_v45 = vpop.permute.xlu2 %397 }
  0x9c   :  { %v840_v8 = vpop.permute.xlu0 %147  ;;  %v363_v11 = vpop.permute.xlu1 %362 }
  0xa4   :  { %v373_v16 = vpop.permute.xlu0 %372  ;;  %v378_v17 = vpop.permute.xlu1 %377 }
  0xac   :  { %v388_v27 = vpop.permute.xlu0 %387  ;;  %v393_v30 = vpop.permute.xlu1 %392 }
  0xb4   :  { %v403_v50 = vpop.permute.xlu0 %402  ;;  %v408_v55 = vpop.permute.xlu1 %407 }
  0xc0   :  { %v288_v9 = vpop.f32.mrf.mxu0  ;;  %v298_v10 = vpop.f32.mrf.mxu1 }
  0xc1   :  { %v289_v23 = vadd.f32 %v288_v9, %v73_v57  ;;  %v299_v32 = vadd.f32 %v298_v10, %v93_v59 }
  0xc3   :  { %v328_v28 = vmax.f32 %v289_v23, 0.0  ;;  %v332_v41 = vmax.f32 %v299_v32, 0.0  ;;  %v423_v23 = vpop.permute.xlu1 %422 }
  0xc5   :  { %v440_v36 = vmul.f32 %v363_v11, %v328_v28  ;;  %v444_v51 = vmul.f32 %v383_v25, %v332_v41 }
  0xc7   :  { %v308_v13 = vpop.f32.mrf.mxu2  ;;  %v318_v18 = vpop.f32.mrf.mxu3 }
  0xc8   :  { %v290_v14 = vpop.f32.mrf.mxu0  ;;  %v300_v15 = vpop.f32.mrf.mxu1  ;;  %v309_v52 = vadd.f32 %v308_v13, %v113_v1  ;;  %v319_v13 = vadd.f32 %v318_v18, %v834_v5 }
  0xc9   :  { %v291_v19 = vadd.f32 %v290_v14, %v78_v60  ;;  %v301_v37 = vadd.f32 %v300_v15, %v98_v62  ;;  %v413_v15 = vpop.permute.xlu2 %412 }
  0xca   :  { %v336_v62 = vmax.f32 %v309_v52, 0.0 }
  0xcb   :  { %v329_v26 = vmax.f32 %v291_v19, 0.0  ;;  %v333_v46 = vmax.f32 %v301_v37, 0.0  ;;  %v418_v19 = vpop.permute.xlu0 %417 }
  0xcc   :  { %v448_v1 = vmul.f32 %v403_v50, %v336_v62 }
  0xcd   :  { %v441_v33 = vmul.f32 %v368_v12, %v329_v26  ;;  %v445_v57 = vmul.f32 %v388_v27, %v333_v46 }
  0xcf   :  { %v310_v20 = vpop.f32.mrf.mxu2  ;;  %v320_v31 = vpop.f32.mrf.mxu3  ;;  %v456_v42 = vadd.f32 %v441_v33, %v440_v36 }
  0xd0   :  { %v293_v21 = vpop.f32.mrf.mxu0  ;;  %v303_v22 = vpop.f32.mrf.mxu1 }
  0xd1   :  { %v294_v24 = vadd.f32 %v293_v21, %v83_v58  ;;  %v304_v43 = vadd.f32 %v303_v22, %v103_v63  ;;  %v311_v58 = vadd.f32 %v310_v20, %v118_v2  ;;  %v321_v20 = vadd.f32 %v320_v31, %v836_v6  ;;  %v428_v33 = vpop.permute.xlu2 %427 }
  0xd3   :  { %v330_v29 = vmax.f32 %v294_v24, 0.0  ;;  %v334_v53 = vmax.f32 %v304_v43, 0.0  ;;  %v337_v11 = vmax.f32 %v311_v58, 0.0  ;;  %v340_v24 = vmax.f32 %v319_v13, 0.0 }
  0xd5   :  { %v442_v38 = vmul.f32 %v373_v16, %v330_v29  ;;  %v446_v63 = vmul.f32 %v393_v30, %v334_v53  ;;  %v449_v2 = vmul.f32 %v408_v55, %v337_v11  ;;  %v452_v18 = vmul.f32 %v423_v23, %v340_v24 }
  0xd7   :  { %v313_v34 = vpop.f32.mrf.mxu2  ;;  %v457_v47 = vadd.f32 %v456_v42, %v442_v38  ;;  %v323_v56 = vpop.f32.mrf.mxu3 }
  0xd8   :  { %v295_v35 = vpop.f32.mrf.mxu0  ;;  %v305_v40 = vpop.f32.mrf.mxu1  ;;  %v314_v9 = vadd.f32 %v313_v34, %v123_v3  ;;  %v324_v26 = vadd.f32 %v323_v56, %v838_v7 }
  0xd9   :  { %v296_v39 = vadd.f32 %v295_v35, %v88_v61  ;;  %v306_v49 = vadd.f32 %v305_v40, %v108_v0  ;;  %v433_v35 = vpop.permute.xlu0 %432  ;;  %v438_v38 = vpop.permute.xlu1 %437 }
  0xda   :  { %v338_v16 = vmax.f32 %v314_v9, 0.0  ;;  %v342_v30 = vmax.f32 %v324_v26, 0.0 }
  0xdb   :  { %v331_v44 = vmax.f32 %v296_v39, 0.0  ;;  %v335_v60 = vmax.f32 %v306_v49, 0.0 }
  0xdc   :  { %v450_v25 = vmul.f32 %v413_v15, %v338_v16  ;;  %v454_v36 = vmul.f32 %v433_v35, %v342_v30 }
  0xdd   :  { %v443_v48 = vmul.f32 %v378_v17, %v331_v44  ;;  %v447_v12 = vmul.f32 %v398_v45, %v335_v60 }
  0xdf   :  { %v458_v54 = vadd.f32 %v457_v47, %v443_v48  ;;  %v315_v61 = vpop.f32.mrf.mxu2  ;;  %v325_v3 = vpop.f32.mrf.mxu3 }
  0xe0   :  { %v316_v0 = vadd.f32 %v315_v61, %v832_v4  ;;  %v341_v4 = vmax.f32 %v321_v20, 0.0  ;;  %v326_v5 = vadd.f32 %v325_v3, %v840_v8  ;;  %v478_v8 = vstv %s857_s4 }
  0xe1   :  { %v459_v59 = vadd.f32 %v458_v54, %v444_v51 }
  0xe2   :  { %v339_v22 = vmax.f32 %v316_v0, 0.0  ;;  %v453_v34 = vmul.f32 %v428_v33, %v341_v4  ;;  %v343_v31 = vmax.f32 %v326_v5, 0.0 }
  0xe3   :  { %v460_v10 = vadd.f32 %v459_v59, %v445_v57 }
  0xe4   :  { %v451_v28 = vmul.f32 %v418_v19, %v339_v22  ;;  %v455_v39 = vmul.f32 %v438_v38, %v343_v31 }
  0xe5   :  { %v461_v14 = vadd.f32 %v460_v10, %v446_v63 }
  0xe7   :  { %v462_v17 = vadd.f32 %v461_v14, %v447_v12 }
  0xe9   :  { %v463_v21 = vadd.f32 %v462_v17, %v448_v1 }
  0xeb   :  { %v464_v27 = vadd.f32 %v463_v21, %v449_v2 }
  0xed   :  { %v465_v29 = vadd.f32 %v464_v27, %v450_v25 }
  0xef   :  { %v466_v32 = vadd.f32 %v465_v29, %v451_v28 }
  0xf1   :  { %v467_v6 = vadd.f32 %v466_v32, %v452_v18 }
  0xf3   :  { %v468_v37 = vadd.f32 %v467_v6, %v453_v34 }
  0xf5   :  { %v469_v40 = vadd.f32 %v468_v37, %v454_v36 }
  0xf7   :  { %v470_v7 = vadd.f32 %v469_v40, %v455_v39 }
  0xf9   :  { %v471_v41 = vrot.slane %v470_v7, 4 }
  0xfb   :  { %v472_v42 = vadd.f32 %v471_v41, %v470_v7 }
  0xfd   :  { %v473_v43 = vrot.slane %v472_v42, 2 }
  0xff   :  { %v474_v44 = vadd.f32 %v473_v43, %v472_v42 }
 0x101   :  { %v475_v45 = vrot.slane %v474_v44, 1 }
 0x103   :  { %v476_v46 = vadd.f32 %v475_v45, %v474_v44 }
 0x105   :  { %v479_v47 = vadd.f32 %v478_v8, %v476_v46 }
 0x107   :  { %480 = vst [vmem:[#allocation3] sm:$0x1] %v479_v47 }
 0x108   :  { %491 = dma.vmem_to_hbm [thread:$0]  %s487_s11, 16, %s489_s14, [#allocation4]  }
 0x109   :  { %638 = dma.done.wait [#allocation4], 16  }
 0x10a   :  { %639 = vsyncadd [#allocation4], 4294967280 }
 0x10b   :  { %496 = vsyncpa [#allocation4], 1 }

</bundles_post_ra>
